<compile_context>
chip_gen: v6e
topology: v6e:2x2x1
jax: 0.10.0
libtpu: 0.0.40
codegen_flags: <defaults>
</compile_context>

<pallas_src>
import functools

import jax
import jax.numpy as jnp
from jax.experimental import pallas as pl
from jax.experimental.pallas import tpu as pltpu


# ----------------------------- Pallas kernel -------------------------------
def sdh_kernel(sample_size,
               s_ref, a_ref, mu_ref, sigma_ref, eps_ref,
               vw1_ref, vb1_ref, aw1s_ref, ab1_ref, aw1a_ref,
               aw2r_ref, vw2r_ref, vb2_ref,
               q_ref, v_ref):
    f32 = jnp.float32
    bf16 = jnp.bfloat16
    S = sample_size

    s = s_ref[...]                               # (Bb, H) f32
    Bb, H = s.shape
    A = a_ref.shape[1]

    s16 = s.astype(bf16)
    aw1a = aw1a_ref[...]                         # (A, H) bf16, resident

    # --- first layers over s: two dots, no concat-and-slice relayouts -------
    vh = jnp.maximum(
        jnp.dot(s16, vw1_ref[...], preferred_element_type=f32) + vb1_ref[...], 0.0)   # (Bb, H)
    hsb = jnp.dot(s16, aw1s_ref[...], preferred_element_type=f32) + ab1_ref[...]      # (Bb, H)

    # --- A-head hidden for the behaviour action -----------------------------
    h_beh = jnp.maximum(
        hsb + jnp.dot(a_ref[...].astype(bf16), aw1a, preferred_element_type=f32),
        0.0)                                                                            # (Bb, H)

    # --- all S sampled actions: leading-axis broadcast + one merged MXU push -
    act3 = jnp.tanh(mu_ref[...][None] + sigma_ref[...][None] * eps_ref[...])   # (S, Bb, A) f32
    act2 = act3.reshape(S * Bb, A)               # f32, Bb % 8 == 0 -> layout-preserving
    ha2 = jnp.dot(act2.astype(bf16), aw1a, preferred_element_type=f32)         # (S*Bb, H)
    h_all = jnp.maximum(hsb[None] + ha2.reshape(S, Bb, H), 0.0)                # (S, Bb, H)
    h_mean = jnp.sum(h_all, axis=0) * (1.0 / S)                                # (Bb, H)

    # --- H->1 projections on the VPU (no width-1 MXU pushes) ----------------
    # a_value - a_mean == (h_beh - h_mean) @ aw2  (A-head output bias cancels)
    aw2r = aw2r_ref[...]                         # (1, H) f32
    vw2r = vw2r_ref[...]                         # (1, H) f32
    v_value = jnp.sum(vh * vw2r, axis=-1, keepdims=True) + vb2_ref[0, 0]       # (Bb, 1)
    a_delta = jnp.sum((h_beh - h_mean) * aw2r, axis=-1, keepdims=True)         # (Bb, 1)

    # TODO(synk): a fully lane-dense (2, block_b) output would need a small
    # in-kernel transpose of these (Bb, 1) columns; the store cost here is tiny.
    q_ref[...] = v_value + a_delta
    v_ref[...] = v_value


# ----------------------------- wrapper --------------------------------------
def stochastic_dueling_head(s, a, mu, sigma, eps, params, *, block_b=None):
    """s:(B,H) a/mu/sigma:(B,A) eps:(S,B,A) pre-drawn N(0,1) reparameterization noise."""
    B, H = s.shape
    A = a.shape[1]
    S = eps.shape[0]
    f32 = jnp.float32
    bf16 = jnp.bfloat16

    if block_b is None:
        block_b = min(B, 256)
        # v7x has 64 MiB VMEM: shrink the batch tile if the f32 (S, block_b, H)
        # sample slab would be large. v5e/v6e (128 MiB) keep the big tile.
        while block_b > 8 and S * block_b * H * 4 > (8 << 20):
            block_b //= 2
    # TODO(synk): pad the batch to a multiple of 8 outside the kernel for ragged B.
    assert B % block_b == 0 and block_b % 8 == 0
    grid = (B // block_b,)

    # ---- one-time parameter prep (outside the kernel) ----
    # MXU weights in bf16 (f32 accumulation in-kernel); VPU weights/biases stay f32.
    vw1 = params["vw1"].astype(bf16)        # (H, H)
    aw1s = params["aw1s"].astype(bf16)      # (H, H)
    aw1a = params["aw1a"].astype(bf16)      # (A, H)
    vb1 = params["vb1"].astype(f32)         # (1, H)
    ab1 = params["ab1"].astype(f32)         # (1, H)
    aw2r = params["aw2"].T.astype(f32)      # (1, H)
    vw2r = params["vw2"].T.astype(f32)      # (1, H)
    vb2 = params["vb2"].astype(f32)         # (1, 1)
    # A-head output bias ab2 cancels in q = v + (a_beh - mean_i a_sample_i).

    const2 = lambda i: (0, 0)
    in_specs = [
        pl.BlockSpec((block_b, H), lambda i: (i, 0)),           # s
        pl.BlockSpec((block_b, A), lambda i: (i, 0)),           # a
        pl.BlockSpec((block_b, A), lambda i: (i, 0)),           # mu
        pl.BlockSpec((block_b, A), lambda i: (i, 0)),           # sigma
        pl.BlockSpec((S, block_b, A), lambda i: (0, i, 0)),     # eps (sample axis leading)
        # resident weights (constant index maps -> DMA'd once, stay in VMEM)
        pl.BlockSpec((H, H), const2),                           # vw1   (bf16)
        pl.BlockSpec((1, H), const2),                           # vb1
        pl.BlockSpec((H, H), const2),                           # aw1s  (bf16)
        pl.BlockSpec((1, H), const2),                           # ab1
        pl.BlockSpec((A, H), const2),                           # aw1a  (bf16)
        pl.BlockSpec((1, H), const2),                           # aw2^T (f32, VPU)
        pl.BlockSpec((1, H), const2),                           # vw2^T (f32, VPU)
        pl.BlockSpec((1, 1), const2,
                     memory_space=pltpu.MemorySpace.SMEM),      # vb2 scalar
    ]
    out_specs = (
        pl.BlockSpec((block_b, 1), lambda i: (i, 0)),           # q_value
        pl.BlockSpec((block_b, 1), lambda i: (i, 0)),           # v_value
    )

    # ---- VMEM budget & cost estimate ----
    act_bytes = 2 * 4 * (block_b * H + 3 * block_b * A + S * block_b * A + 2 * block_b)
    w_bytes = 2 * (2 * (2 * H * H + A * H) + 4 * 4 * H)
    tmp_bytes = 4 * (3 * S * block_b * H + 4 * block_b * H)
    vmem_limit = int(min(max(32 << 20, 2 * (act_bytes + w_bytes + tmp_bytes)), 64 << 20))

    cost = pl.CostEstimate(
        flops=int(2 * B * H * H * 2 + 2 * B * A * H * (S + 1) + 6 * B * S * H),
        transcendentals=int(B * S * A),
        bytes_accessed=int(4 * (B * H + 3 * B * A + S * B * A + 2 * B)
                           + 2 * (2 * H * H + A * H) + 4 * (4 * H + 1)),
    )

    q, v = pl.pallas_call(
        functools.partial(sdh_kernel, S),
        out_shape=(jax.ShapeDtypeStruct((B, 1), f32),
                   jax.ShapeDtypeStruct((B, 1), f32)),
        grid=grid,
        in_specs=in_specs,
        out_specs=out_specs,
        compiler_params=pltpu.CompilerParams(
            dimension_semantics=("parallel",),                  # megacore / v7x dual-TC
            vmem_limit_bytes=vmem_limit),
        cost_estimate=cost,
    )(s, a, mu, sigma, eps, vw1, vb1, aw1s, ab1, aw1a, aw2r, vw2r, vb2)

    return {"q_value": q, "v_value": v}


# ----------------------------- pure-JAX reference ---------------------------
def ref_forward(s, a, mu, sigma, eps, params):
    aw1 = jnp.concatenate([params["aw1s"], params["aw1a"]], axis=0)

    def A_head(x):
        h = jax.nn.relu(x @ aw1 + params["ab1"])
        return h @ params["aw2"] + params["ab2"]

    def V_head(x):
        h = jax.nn.relu(x @ params["vw1"] + params["vb1"])
        return h @ params["vw2"] + params["vb2"]

    B, H = s.shape
    a_value = A_head(jnp.concatenate([s, a], axis=1))        # (B, 1)
    v_value = V_head(s)                                      # (B, 1)
    act = jnp.tanh(mu[None] + sigma[None] * eps)             # (S, B, A)
    act = jnp.transpose(act, (1, 0, 2))                      # (B, S, A)
    S = act.shape[1]
    expand_s = jnp.broadcast_to(s[:, None, :], (B, S, H))
    x = jnp.concatenate([expand_s, act], axis=-1)            # (B, S, H+A)
    a_samp = A_head(x)                                       # (B, S, 1)
    q = v_value + a_value - a_samp.mean(axis=1)
    return q, v_value


# ----------------------------- main -----------------------------------------
if __name__ == "__main__":
    B, H, A, S = 16, 32, 4, 10   # batch, hidden_size, action_shape, sample_size

    key = jax.random.PRNGKey(0)
    keys = jax.random.split(key, 16)

    def uinit(k, shape, fan_in):
        bound = 1.0 / (fan_in ** 0.5)
        return jax.random.uniform(k, shape, jnp.float32, -bound, bound)

    # A head: MLP(H+A -> H, 1 layer, ReLU) + Linear(H -> 1)
    # V head: MLP(H   -> H, 1 layer, ReLU) + Linear(H -> 1)
    params = {
        "aw1s": uinit(keys[0], (H, H), H + A),
        "aw1a": uinit(keys[1], (A, H), H + A),
        "ab1":  uinit(keys[2], (1, H), H + A),
        "aw2":  uinit(keys[3], (H, 1), H),
        "ab2":  uinit(keys[4], (1, 1), H),
        "vw1":  uinit(keys[5], (H, H), H),
        "vb1":  uinit(keys[6], (1, H), H),
        "vw2":  uinit(keys[7], (H, 1), H),
        "vb2":  uinit(keys[8], (1, 1), H),
    }

    s = jax.random.normal(keys[9], (B, H), jnp.float32)
    a = jax.random.normal(keys[10], (B, A), jnp.float32)
    mu = jax.random.normal(keys[11], (B, A), jnp.float32)
    sigma = jax.nn.softplus(jax.random.normal(keys[12], (B, A), jnp.float32)) + 0.1
    # reparameterized sampling noise drawn outside the kernel (deterministic)
    eps = jax.random.normal(keys[13], (S, B, A), jnp.float32)

    out = stochastic_dueling_head(s, a, mu, sigma, eps, params, block_b=8)
    jax.block_until_ready(out)

    q_ref, v_ref = ref_forward(s, a, mu, sigma, eps, params)
    assert out["q_value"].shape == (B, 1) and out["v_value"].shape == (B, 1)
    # bf16 MXU operands with f32 accumulation -> relaxed tolerance vs the f32 reference.
    assert jnp.allclose(out["q_value"], q_ref, atol=3e-2, rtol=3e-2)
    assert jnp.allclose(out["v_value"], v_ref, atol=3e-2, rtol=3e-2)

    print("KERNEL_OK")
</pallas_src>

<mosaic_0001>
module attributes {stable_mosaic.version = 11 : i64} {
  func.func @sdh_kernel(%arg0: i32, %arg1: memref<8x32xf32, #tpu.memory_space<vmem>>, %arg2: memref<8x4xf32, #tpu.memory_space<vmem>>, %arg3: memref<8x4xf32, #tpu.memory_space<vmem>>, %arg4: memref<8x4xf32, #tpu.memory_space<vmem>>, %arg5: memref<10x8x4xf32, #tpu.memory_space<vmem>>, %arg6: memref<32x32xbf16, #tpu.memory_space<vmem>>, %arg7: memref<1x32xf32, #tpu.memory_space<vmem>>, %arg8: memref<32x32xbf16, #tpu.memory_space<vmem>>, %arg9: memref<1x32xf32, #tpu.memory_space<vmem>>, %arg10: memref<4x32xbf16, #tpu.memory_space<vmem>>, %arg11: memref<1x32xf32, #tpu.memory_space<vmem>>, %arg12: memref<1x32xf32, #tpu.memory_space<vmem>>, %arg13: memref<1x1xf32, #tpu.memory_space<smem>>, %arg14: memref<8x1xf32, #tpu.memory_space<vmem>>, %arg15: memref<8x1xf32, #tpu.memory_space<vmem>>) attributes {dimension_semantics = [#tpu.dimension_semantics<parallel>], iteration_bounds = array<i64: 2>, scalar_prefetch = 0 : i64, scratch_operands = 0 : i64, tpu.core_type = #tpu.core_type<tc>, window_params = [{transform_indices = @transform_0, window_bounds = array<i64: 8, 32>}, {transform_indices = @transform_1, window_bounds = array<i64: 8, 4>}, {transform_indices = @transform_2, window_bounds = array<i64: 8, 4>}, {transform_indices = @transform_3, window_bounds = array<i64: 8, 4>}, {transform_indices = @transform_4, window_bounds = array<i64: 10, 8, 4>}, {pipeline_mode = #tpu.pipeline_mode<synchronous>, transform_indices = @transform_5, window_bounds = array<i64: 32, 32>}, {pipeline_mode = #tpu.pipeline_mode<synchronous>, transform_indices = @transform_6, window_bounds = array<i64: 1, 32>}, {pipeline_mode = #tpu.pipeline_mode<synchronous>, transform_indices = @transform_7, window_bounds = array<i64: 32, 32>}, {pipeline_mode = #tpu.pipeline_mode<synchronous>, transform_indices = @transform_8, window_bounds = array<i64: 1, 32>}, {pipeline_mode = #tpu.pipeline_mode<synchronous>, transform_indices = @transform_9, window_bounds = array<i64: 4, 32>}, {pipeline_mode = #tpu.pipeline_mode<synchronous>, transform_indices = @transform_10, window_bounds = array<i64: 1, 32>}, {pipeline_mode = #tpu.pipeline_mode<synchronous>, transform_indices = @transform_11, window_bounds = array<i64: 1, 32>}, {transform_indices = @transform_12, window_bounds = array<i64: 1, 1>}, {transform_indices = @transform_13, window_bounds = array<i64: 8, 1>}, {transform_indices = @transform_14, window_bounds = array<i64: 8, 1>}]} {
    %c0 = arith.constant 0 : index
    %c0_0 = arith.constant 0 : index
    %0 = vector.load %arg1[%c0, %c0_0] : memref<8x32xf32, #tpu.memory_space<vmem>>, vector<8x32xf32>
    %1 = arith.truncf %0 : vector<8x32xf32> to vector<8x32xbf16>
    %c0_1 = arith.constant 0 : index
    %c0_2 = arith.constant 0 : index
    %2 = vector.load %arg10[%c0_1, %c0_2] : memref<4x32xbf16, #tpu.memory_space<vmem>>, vector<4x32xbf16>
    %c0_3 = arith.constant 0 : index
    %c0_4 = arith.constant 0 : index
    %3 = vector.load %arg6[%c0_3, %c0_4] : memref<32x32xbf16, #tpu.memory_space<vmem>>, vector<32x32xbf16>
    %cst = arith.constant dense<0.000000e+00> : vector<8x32xf32>
    %4 = tpu.matmul %1, %3, %cst {dimension_numbers = #tpu.dot_dimension_numbers<[1], [0], [0], [1], [0, 0, 1, 1], [], []>} : vector<8x32xbf16>, vector<32x32xbf16>, vector<8x32xf32> -> vector<8x32xf32>
    %c0_5 = arith.constant 0 : index
    %c0_6 = arith.constant 0 : index
    %5 = vector.load %arg7[%c0_5, %c0_6] : memref<1x32xf32, #tpu.memory_space<vmem>>, vector<1x32xf32>
    %6 = vector.broadcast %5 : vector<1x32xf32> to vector<8x32xf32>
    %7 = arith.addf %4, %6 : vector<8x32xf32>
    %cst_7 = arith.constant 0.000000e+00 : f32
    %8 = vector.broadcast %cst_7 : f32 to vector<8x32xf32>
    %9 = arith.maximumf %7, %8 : vector<8x32xf32>
    %c0_8 = arith.constant 0 : index
    %c0_9 = arith.constant 0 : index
    %10 = vector.load %arg8[%c0_8, %c0_9] : memref<32x32xbf16, #tpu.memory_space<vmem>>, vector<32x32xbf16>
    %cst_10 = arith.constant dense<0.000000e+00> : vector<8x32xf32>
    %11 = tpu.matmul %1, %10, %cst_10 {dimension_numbers = #tpu.dot_dimension_numbers<[1], [0], [0], [1], [0, 0, 1, 1], [], []>} : vector<8x32xbf16>, vector<32x32xbf16>, vector<8x32xf32> -> vector<8x32xf32>
    %c0_11 = arith.constant 0 : index
    %c0_12 = arith.constant 0 : index
    %12 = vector.load %arg9[%c0_11, %c0_12] : memref<1x32xf32, #tpu.memory_space<vmem>>, vector<1x32xf32>
    %13 = vector.broadcast %12 : vector<1x32xf32> to vector<8x32xf32>
    %14 = arith.addf %11, %13 : vector<8x32xf32>
    %c0_13 = arith.constant 0 : index
    %c0_14 = arith.constant 0 : index
    %15 = vector.load %arg2[%c0_13, %c0_14] : memref<8x4xf32, #tpu.memory_space<vmem>>, vector<8x4xf32>
    %16 = arith.truncf %15 : vector<8x4xf32> to vector<8x4xbf16>
    %cst_15 = arith.constant dense<0.000000e+00> : vector<8x32xf32>
    %17 = tpu.matmul %16, %2, %cst_15 {dimension_numbers = #tpu.dot_dimension_numbers<[1], [0], [0], [1], [0, 0, 1, 1], [], []>} : vector<8x4xbf16>, vector<4x32xbf16>, vector<8x32xf32> -> vector<8x32xf32>
    %18 = arith.addf %14, %17 : vector<8x32xf32>
    %cst_16 = arith.constant 0.000000e+00 : f32
    %19 = vector.broadcast %cst_16 : f32 to vector<8x32xf32>
    %20 = arith.maximumf %18, %19 : vector<8x32xf32>
    %c0_17 = arith.constant 0 : index
    %c0_18 = arith.constant 0 : index
    %21 = vector.load %arg3[%c0_17, %c0_18] : memref<8x4xf32, #tpu.memory_space<vmem>>, vector<8x4xf32>
    %22 = vector.shape_cast %21 : vector<8x4xf32> to vector<1x8x4xf32>
    %c0_19 = arith.constant 0 : index
    %c0_20 = arith.constant 0 : index
    %23 = vector.load %arg4[%c0_19, %c0_20] : memref<8x4xf32, #tpu.memory_space<vmem>>, vector<8x4xf32>
    %24 = vector.shape_cast %23 : vector<8x4xf32> to vector<1x8x4xf32>
    %c0_21 = arith.constant 0 : index
    %c0_22 = arith.constant 0 : index
    %c0_23 = arith.constant 0 : index
    %25 = vector.load %arg5[%c0_21, %c0_22, %c0_23] : memref<10x8x4xf32, #tpu.memory_space<vmem>>, vector<10x8x4xf32>
    %26 = vector.broadcast %24 : vector<1x8x4xf32> to vector<10x8x4xf32>
    %27 = arith.mulf %26, %25 : vector<10x8x4xf32>
    %28 = vector.broadcast %22 : vector<1x8x4xf32> to vector<10x8x4xf32>
    %29 = arith.addf %28, %27 : vector<10x8x4xf32>
    %30 = math.tanh %29 : vector<10x8x4xf32>
    %31 = vector.shape_cast %30 : vector<10x8x4xf32> to vector<80x4xf32>
    %32 = arith.truncf %31 : vector<80x4xf32> to vector<80x4xbf16>
    %cst_24 = arith.constant dense<0.000000e+00> : vector<80x32xf32>
    %33 = tpu.matmul %32, %2, %cst_24 {dimension_numbers = #tpu.dot_dimension_numbers<[1], [0], [0], [1], [0, 0, 1, 1], [], []>} : vector<80x4xbf16>, vector<4x32xbf16>, vector<80x32xf32> -> vector<80x32xf32>
    %34 = vector.shape_cast %14 : vector<8x32xf32> to vector<1x8x32xf32>
    %35 = vector.shape_cast %33 : vector<80x32xf32> to vector<10x8x32xf32>
    %36 = vector.broadcast %34 : vector<1x8x32xf32> to vector<10x8x32xf32>
    %37 = arith.addf %36, %35 : vector<10x8x32xf32>
    %cst_25 = arith.constant 0.000000e+00 : f32
    %38 = vector.broadcast %cst_25 : f32 to vector<10x8x32xf32>
    %39 = arith.maximumf %37, %38 : vector<10x8x32xf32>
    %cst_26 = arith.constant dense<0.000000e+00> : vector<8x32xf32>
    %40 = vector.multi_reduction <add>, %39, %cst_26 [0] : vector<10x8x32xf32> to vector<8x32xf32>
    %cst_27 = arith.constant 1.000000e-01 : f32
    %41 = vector.broadcast %cst_27 : f32 to vector<8x32xf32>
    %42 = arith.mulf %40, %41 : vector<8x32xf32>
    %c0_28 = arith.constant 0 : index
    %c0_29 = arith.constant 0 : index
    %43 = vector.load %arg11[%c0_28, %c0_29] : memref<1x32xf32, #tpu.memory_space<vmem>>, vector<1x32xf32>
    %c0_30 = arith.constant 0 : index
    %c0_31 = arith.constant 0 : index
    %44 = vector.load %arg12[%c0_30, %c0_31] : memref<1x32xf32, #tpu.memory_space<vmem>>, vector<1x32xf32>
    %45 = vector.broadcast %44 : vector<1x32xf32> to vector<8x32xf32>
    %46 = arith.mulf %9, %45 : vector<8x32xf32>
    %cst_32 = arith.constant dense<0.000000e+00> : vector<8xf32>
    %47 = vector.multi_reduction <add>, %46, %cst_32 [1] : vector<8x32xf32> to vector<8xf32>
    %48 = vector.shape_cast %47 : vector<8xf32> to vector<8x1xf32>
    %c0_33 = arith.constant 0 : index
    %c0_34 = arith.constant 0 : index
    %49 = memref.load %arg13[%c0_33, %c0_34] : memref<1x1xf32, #tpu.memory_space<smem>>
    %50 = vector.broadcast %49 : f32 to vector<8x1xf32>
    %51 = arith.addf %48, %50 : vector<8x1xf32>
    %52 = arith.subf %20, %42 : vector<8x32xf32>
    %53 = vector.broadcast %43 : vector<1x32xf32> to vector<8x32xf32>
    %54 = arith.mulf %52, %53 : vector<8x32xf32>
    %cst_35 = arith.constant dense<0.000000e+00> : vector<8xf32>
    %55 = vector.multi_reduction <add>, %54, %cst_35 [1] : vector<8x32xf32> to vector<8xf32>
    %56 = vector.shape_cast %55 : vector<8xf32> to vector<8x1xf32>
    %57 = arith.addf %51, %56 : vector<8x1xf32>
    %c0_36 = arith.constant 0 : index
    %c0_37 = arith.constant 0 : index
    %58 = vector.load %arg14[%c0_36, %c0_37] : memref<8x1xf32, #tpu.memory_space<vmem>>, vector<8x1xf32>
    tpu.vector_store %arg14[%c0_36, %c0_37], %57 {strides = array<i32>} : memref<8x1xf32, #tpu.memory_space<vmem>>, vector<8x1xf32>,
    %c0_38 = arith.constant 0 : index
    %c0_39 = arith.constant 0 : index
    %59 = vector.load %arg15[%c0_38, %c0_39] : memref<8x1xf32, #tpu.memory_space<vmem>>, vector<8x1xf32>
    tpu.vector_store %arg15[%c0_38, %c0_39], %51 {strides = array<i32>} : memref<8x1xf32, #tpu.memory_space<vmem>>, vector<8x1xf32>,
    return
  }
  func.func @transform_0(%arg0: i32) -> (i32, i32) {
    %c0_i32 = arith.constant 0 : i32
    %c0_i32_0 = arith.constant 0 : i32
    return %arg0, %c0_i32 : i32, i32
  }
  func.func @transform_1(%arg0: i32) -> (i32, i32) {
    %c0_i32 = arith.constant 0 : i32
    %c0_i32_0 = arith.constant 0 : i32
    return %arg0, %c0_i32 : i32, i32
  }
  func.func @transform_2(%arg0: i32) -> (i32, i32) {
    %c0_i32 = arith.constant 0 : i32
    %c0_i32_0 = arith.constant 0 : i32
    return %arg0, %c0_i32 : i32, i32
  }
  func.func @transform_3(%arg0: i32) -> (i32, i32) {
    %c0_i32 = arith.constant 0 : i32
    %c0_i32_0 = arith.constant 0 : i32
    return %arg0, %c0_i32 : i32, i32
  }
  func.func @transform_4(%arg0: i32) -> (i32, i32, i32) {
    %c0_i32 = arith.constant 0 : i32
    %c0_i32_0 = arith.constant 0 : i32
    %c0_i32_1 = arith.constant 0 : i32
    return %c0_i32, %arg0, %c0_i32_0 : i32, i32, i32
  }
  func.func @transform_5(%arg0: i32) -> (i32, i32) {
    %c0_i32 = arith.constant 0 : i32
    %c0_i32_0 = arith.constant 0 : i32
    %c0_i32_1 = arith.constant 0 : i32
    return %c0_i32, %c0_i32_0 : i32, i32
  }
  func.func @transform_6(%arg0: i32) -> (i32, i32) {
    %c0_i32 = arith.constant 0 : i32
    %c0_i32_0 = arith.constant 0 : i32
    %c0_i32_1 = arith.constant 0 : i32
    return %c0_i32, %c0_i32_0 : i32, i32
  }
  func.func @transform_7(%arg0: i32) -> (i32, i32) {
    %c0_i32 = arith.constant 0 : i32
    %c0_i32_0 = arith.constant 0 : i32
    %c0_i32_1 = arith.constant 0 : i32
    return %c0_i32, %c0_i32_0 : i32, i32
  }
  func.func @transform_8(%arg0: i32) -> (i32, i32) {
    %c0_i32 = arith.constant 0 : i32
    %c0_i32_0 = arith.constant 0 : i32
    %c0_i32_1 = arith.constant 0 : i32
    return %c0_i32, %c0_i32_0 : i32, i32
  }
  func.func @transform_9(%arg0: i32) -> (i32, i32) {
    %c0_i32 = arith.constant 0 : i32
    %c0_i32_0 = arith.constant 0 : i32
    %c0_i32_1 = arith.constant 0 : i32
    return %c0_i32, %c0_i32_0 : i32, i32
  }
  func.func @transform_10(%arg0: i32) -> (i32, i32) {
    %c0_i32 = arith.constant 0 : i32
    %c0_i32_0 = arith.constant 0 : i32
    %c0_i32_1 = arith.constant 0 : i32
    return %c0_i32, %c0_i32_0 : i32, i32
  }
  func.func @transform_11(%arg0: i32) -> (i32, i32) {
    %c0_i32 = arith.constant 0 : i32
    %c0_i32_0 = arith.constant 0 : i32
    %c0_i32_1 = arith.constant 0 : i32
    return %c0_i32, %c0_i32_0 : i32, i32
  }
  func.func @transform_12(%arg0: i32) -> (i32, i32) {
    %c0_i32 = arith.constant 0 : i32
    %c0_i32_0 = arith.constant 0 : i32
    %c0_i32_1 = arith.constant 0 : i32
    return %c0_i32, %c0_i32_0 : i32, i32
  }
  func.func @transform_13(%arg0: i32) -> (i32, i32) {
    %c0_i32 = arith.constant 0 : i32
    %c0_i32_0 = arith.constant 0 : i32
    return %arg0, %c0_i32 : i32, i32
  }
  func.func @transform_14(%arg0: i32) -> (i32, i32) {
    %c0_i32 = arith.constant 0 : i32
    %c0_i32_0 = arith.constant 0 : i32
    return %arg0, %c0_i32 : i32, i32
  }
}

</mosaic_0001>

<bundles_post_ra>
// kernel: tpu_custom_call.1
= control target key start
LH: loop header
LB: loop body
LE: loop exit
PB: predicated region body
PF: predicated region fallthrough
CT: control target
= control target key end

     0   :  { %s1555_s0 = inlined_call_operand.vmem [shape: f32[16,32], index: 0, kind: input, shape index: {}]   ;;  %s1556_s1 = inlined_call_operand.vmem [shape: f32[16,4], index: 1, kind: input, shape index: {}]   ;;  %s1557_s2 = inlined_call_operand.vmem [shape: f32[16,4], index: 2, kind: input, shape index: {}]   ;;  %s1558_s3 = inlined_call_operand.vmem [shape: f32[16,4], index: 3, kind: input, shape index: {}]   ;;  %s1559_s4 = inlined_call_operand.vmem [shape: f32[10,16,4], index: 4, kind: input, shape index: {}]   ;;  %s1560_s5 = inlined_call_operand.vmem [shape: bf16[32,32], index: 5, kind: input, shape index: {}]   ;;  %s1561_s6 = inlined_call_operand.vmem [shape: f32[1,32], index: 6, kind: input, shape index: {}]   ;;  %s1562_s7 = inlined_call_operand.vmem [shape: bf16[32,32], index: 7, kind: input, shape index: {}]   ;;  %s1563_s8 = inlined_call_operand.vmem [shape: f32[1,32], index: 8, kind: input, shape index: {}]   ;;  %s1564_s9 = inlined_call_operand.vmem [shape: bf16[4,32], index: 9, kind: input, shape index: {}]   ;;  %s1565_s10 = inlined_call_operand.vmem [shape: f32[1,32], index: 10, kind: input, shape index: {}]   ;;  %s1566_s11 = inlined_call_operand.vmem [shape: f32[1,32], index: 11, kind: input, shape index: {}]   ;;  %s1567_s12 = inlined_call_operand.<no memory space> [shape: f32[1,1], index: 12, kind: input, shape index: {}]   ;;  %s1568_s13 = inlined_call_operand.vmem [shape: f32[16,1], index: 13, kind: output, shape index: {0}]   ;;  %s1569_s14 = inlined_call_operand.vmem [shape: f32[16,1], index: 14, kind: output, shape index: {1}]  }
   0x1   :  { %20 = sst [smem:[#allocation2]] %s1567_s12 }
   0x2   :  { %s1393_s15 = smov 0   ;;  %s1395_s16 = smov 0  }
   0x3   :  { %s1397_s17 = smov 0  }
   0x4 LB: > { %s1147_s12 = sadd.s32 4294967295, %s1311_s17   ;;  %s1410_s18 = sadd.s32 1, %s1311_s17   ;;  %s1311_s17 = sphi %s1397_s17, %s1572_s17   ;;  %s1307_s16 = sphi %s1395_s16, %s1571_s16   ;;  %s1303_s15 = sphi %s1393_s15, %s1570_s15  }
   0x5   : > { %s134_s19 = ssub.s32 %s1311_s17, %s1410_s18  ;;  %s137_s20 = sadd.s32 1, %s1307_s16 }
   0x6   : > { %p135_p0 = scmp.eq.s32.totalorder %s134_s19, 0  ;;  %p144_p1 = scmp.ne.s32.totalorder %s1307_s16, %s1303_s15 }
   0x7   : > { %p145_p2 = scmp.eq.s32.totalorder %s1311_s17, 0  ;;  %p1150_p4 = scmp.ge.s32.totalorder %s1311_s17, 2 }
   0x8   : > { %s1419_s21 = scalar_select %p135_p0, %s1307_s16, %s137_s20  }
   0x9   : > { %p146_p3 = por %p145_p2, %p144_p1  ;;  %414 = sbr.rel (%p1150_p4) target bundleno = 23 (0x17), region = 48 }
   0xe   : > { %445 = sbr.rel (!%p146_p3) target bundleno = 23 (0x17), region = 68  ;;  %s447_s22 = sand.u32 (%p146_p3), 1, %s1307_s16  }
   0xf   : > { %s1151_s23 = sshll.u32 (%p146_p3), %s1311_s17, 3  ;;  %s1237_s24 = smul.u32 (%p146_p3), 80, %s447_s22 }
  0x10   : > { %s451_s27 = scalar_lea.vmem (%p146_p3), %s1559_s4, %s1151_s23 }
  0x11   : > { %v498_v0 = vld [vmem:[%s451_s27] sm:$0xff] (%p146_p3)  ;;  %v500_v1 = vld [vmem:[%s451_s27 + $0x10] sm:$0xff] (%p146_p3)  ;;  %s449_s28 = scalar_lea.vmem (%p146_p3), [#allocation3], %s1237_s24 }
  0x12   : > { %v502_v2 = vld [vmem:[%s451_s27 + $0x20] sm:$0xff] (%p146_p3)  ;;  %v504_v3 = vld [vmem:[%s451_s27 + $0x30] sm:$0xff] (%p146_p3)  ;;  %499 = vst [vmem:[%s449_s28] sm:$0xff] (%p146_p3), %v498_v0  ;;  %501 = vst [vmem:[%s449_s28 + $0x8] sm:$0xff] (%p146_p3), %v500_v1 }
  0x13   : > { %v506_v4 = vld [vmem:[%s451_s27 + $0x40] sm:$0xff]  ;;  %v508_v5 = vld [vmem:[%s451_s27 + $0x50] sm:$0xff]  ;;  %503 = vst [vmem:[%s449_s28 + $0x10] sm:$0xff] %v502_v2  ;;  %505 = vst [vmem:[%s449_s28 + $0x18] sm:$0xff] %v504_v3 }
  0x14   : > { %507 = vst [vmem:[%s449_s28 + $0x20] sm:$0xff] %v506_v4  ;;  %509 = vst [vmem:[%s449_s28 + $0x28] sm:$0xff] %v508_v5  ;;  %v510_v6 = vld [vmem:[%s451_s27 + $0x60] sm:$0xff]  ;;  %v512_v7 = vld [vmem:[%s451_s27 + $0x70] sm:$0xff] }
  0x15   : > { %v514_v8 = vld [vmem:[%s451_s27 + $0x80] sm:$0xff]  ;;  %511 = vst [vmem:[%s449_s28 + $0x30] sm:$0xff] %v510_v6  ;;  %513 = vst [vmem:[%s449_s28 + $0x38] sm:$0xff] %v512_v7  ;;  %v516_v9 = vld [vmem:[%s451_s27 + $0x90] sm:$0xff] }
  0x16   : > { %515 = vst [vmem:[%s449_s28 + $0x40] sm:$0xff] %v514_v8  ;;  %517 = vst [vmem:[%s449_s28 + $0x48] sm:$0xff] %v516_v9 }
  0x17 PF: > { %p1152_p5 = scmp.ge.s32.totalorder %s1311_s17, 1  ;;  %p522_p6 = scmp.lt.s32.totalorder %s1311_s17, 3 }
  0x19   : > { %p523_p7 = pnand %p1152_p5, %p522_p6 }
  0x1a   : > { %p593_p8 = scmp.lt.s32.totalorder (!%p523_p7), %s1147_s12, 1  ;;  %s529_s26 = sand.u32 (!%p523_p7), 1, %s1303_s15  }
  0x1b   : > { %526 = sbr.rel (%p523_p7) target bundleno = 433 (0x1b1), region = 106 }
  0x1c   : > { %s1238_s17 = smul.u32 (!%p523_p7), 80, %s529_s26 }
  0x1e   : > { %s1477_s30 = scalar_lea.vmem (!%p523_p7), [#allocation3], %s1238_s17 }
  0x20   : > { %v1265_v10 = vld [vmem:[%s1560_s5 + $0x8] sm:$0xff]   ;;  %v1313_v11 = vmov 0.0   ;;  %v1266_v12 = vld [vmem:[%s1560_s5] sm:$0xff]   ;;  %vm1314_vm0 = vmmov 0   ;;  %s1574_s12 = smov (!%p593_p8, %s1147_s12), 1  ;;  %vm758_vm1 = vcmask 1041408  }
  0x21   : > { %1191 = vmatprep.subr.bf16.mxu0 %v1313_v11  ;;  %1199 = vmatprep.subr.bf16.mxu1 %v1313_v11  ;;  %v1267_v13 = vld [vmem:[%s1562_s7 + $0x8] sm:$0xff]   ;;  %v1268_v14 = vld [vmem:[%s1562_s7] sm:$0xff]   ;;  %s1453_s27 = sshll.u32 %s1574_s12, 3  ;;  %vm644_vm2 = vcmask 261120   ;;  %vm754_vm3 = vcmask 31744   ;;  %vm1006_vm4 = vcmask 7168  }
  0x22   : > { %1192 = vmatpush3.bf16.msra.mxu0 %v1265_v10  ;;  %1195 = vmatprep.mubr.msk.bf16.mxu0 %vm1314_vm0, %v1313_v11  ;;  %v620_v15 = vld [vmem:[%s1564_s9] sm:$0x3]  ;;  %s596_s20 = scalar_lea.vmem %s1555_s0, %s1453_s27  ;;  %s604_s12 = scalar_lea.vmem %s1557_s2, %s1453_s27  ;;  %v807_v23 = vld [vmem:[%s1477_s30 + $0x8] sm:$0xff]  ;;  %v809_v30 = vld [vmem:[%s1477_s30 + $0x18] sm:$0xff] }
  0x23   : > { %1193 = vmatprep.subr.bf16.mxu0 %v1313_v11  ;;  %1203 = vmatprep.mubr.msk.bf16.mxu1 %vm1314_vm0, %v1313_v11  ;;  %s608_s25 = scalar_lea.vmem %s1558_s3, %s1453_s27  ;;  %v618_v16 = vld [vmem:[%s596_s20] sm:$0xff]  ;;  %s600_s26 = scalar_lea.vmem %s1556_s1, %s1453_s27  ;;  %v760_v20 = vsel %vm758_vm1, %v620_v15, 0  ;;  %v811_v27 = vld [vmem:[%s1477_s30 + $0x28] sm:$0xff]  ;;  %v813_v35 = vld [vmem:[%s1477_s30 + $0x38] sm:$0xff] }
  0x24   : > { %1200 = vmatpush3.bf16.msra.mxu1 %v1267_v13  ;;  %v619_v17 = vpack.c.bf16 %v618_v16, %v618_v16  ;;  %v804_v18 = vld [vmem:[%s604_s12] sm:$0xff]  ;;  %v815_v48 = vld [vmem:[%s1477_s30 + $0x48] sm:$0xff]  ;;  %s612_s19 = scalar_lea.vmem %s1568_s13, %s1453_s27 }
  0x25   : > { %1201 = vmatprep.subr.bf16.mxu1 %v1313_v11  ;;  %v805_v19 = vld [vmem:[%s608_s25] sm:$0xff]  ;;  %s991_s25 = sld [smem:[#allocation2]] }
  0x26   : > { %1194 = vmatpush3.bf16.msra.mxu0 %v1266_v12  ;;  %v752_v21 = vld [vmem:[%s600_s26] sm:$0xff]  ;;  %v817_v26 = vmul.f32 %v807_v23, %v805_v19  ;;  %v821_v31 = vmul.f32 %v811_v27, %v805_v19  ;;  %v819_v33 = vmul.f32 %v809_v30, %v805_v19  ;;  %v823_v43 = vmul.f32 %v813_v35, %v805_v19  ;;  %s616_s26 = scalar_lea.vmem %s1569_s14, %s1453_s27 }
  0x27   : > { %1207 = vmatprep.subr.bf16.mxu0 %v1313_v11  ;;  %v806_v22 = vld [vmem:[%s1477_s30] sm:$0xff]  ;;  %v808_v29 = vld [vmem:[%s1477_s30 + $0x10] sm:$0xff]  ;;  %v753_v39 = vpack.c.bf16 %v752_v21, %v752_v21  ;;  %v825_v50 = vmul.f32 %v815_v48, %v805_v19 }
  0x28   : > { %1202 = vmatpush3.bf16.msra.mxu1 %v1268_v14  ;;  %v810_v24 = vld [vmem:[%s1477_s30 + $0x20] sm:$0xff]  ;;  %v816_v25 = vmul.f32 %v806_v22, %v805_v19  ;;  %v818_v32 = vmul.f32 %v808_v29, %v805_v19  ;;  %v812_v34 = vld [vmem:[%s1477_s30 + $0x30] sm:$0xff]  ;;  %v827_v37 = vadd.f32 %v817_v26, %v804_v18  ;;  %v831_v40 = vadd.f32 %v821_v31, %v804_v18 }
  0x29   : > { %1235 = vmatprep.subr.bf16.mxu1 %v1313_v11  ;;  %1196 = vmatmul.mubr.msk.bf16.vlgmr.msra.gmra.mxu0 %vm644_vm2, %v619_v17  ;;  %v820_v28 = vmul.f32 %v810_v24, %v805_v19  ;;  %v822_v42 = vmul.f32 %v812_v34, %v805_v19  ;;  %v829_v44 = vadd.f32 %v819_v33, %v804_v18  ;;  %v814_v47 = vld [vmem:[%s1477_s30 + $0x40] sm:$0xff] }
  0x2a   : > { %1208 = vmatpush3.bf16.msra.mxu0 %v760_v20  ;;  %1209 = vmatprep.mubr.msk.bf16.mxu0 %vm1314_vm0, %v1313_v11  ;;  %v826_v36 = vadd.f32 %v816_v25, %v804_v18  ;;  %v828_v41 = vadd.f32 %v818_v32, %v804_v18  ;;  %v833_v46 = vadd.f32 %v823_v43, %v804_v18  ;;  %v1159_v4 = vld [vmem:[%s1561_s6] ss:$0 sm:$0xff] }
  0x2b   : > { %1204 = vmatmul.mubr.msk.bf16.vlgmr.msra.gmra.mxu1 %vm644_vm2, %v619_v17  ;;  %1213 = vmatprep.subr.bf16.mxu0 %v1313_v11  ;;  %v830_v38 = vadd.f32 %v820_v28, %v804_v18  ;;  %v832_v45 = vadd.f32 %v822_v42, %v804_v18  ;;  %v824_v49 = vmul.f32 %v814_v47, %v805_v19  ;;  %v1173_v9 = vld [vmem:[%s1566_s11] ss:$0 sm:$0xff] }
  0x2c   : > { %1236 = vmatpush3.bf16.msra.mxu1 %v760_v20  ;;  %1223 = vmatprep.mubr.msk.bf16.mxu1 %vm1314_vm0, %v1313_v11  ;;  %1269 = vtanh.f32 %v826_v36  ;;  %v835_v52 = vadd.f32 %v825_v50, %v804_v18  ;;  %v1163_v22 = vld [vmem:[%s1563_s8] ss:$0 sm:$0xff] }
  0x2d   : > { %1271 = vtanh.f32 %v827_v37  ;;  %v834_v51 = vadd.f32 %v824_v49, %v804_v18 }
  0x2e   : > { %1273 = vtanh.f32 %v830_v38 }
  0x2f   : > { %1275 = vtanh.f32 %v831_v40 }
  0x30   : > { %1277 = vtanh.f32 %v828_v41 }
  0x31   : > { %1210 = vmatmul.mubr.msk.bf16.vlgmr.msra.gmra.mxu0 %vm754_vm3, %v753_v39  ;;  %1279 = vtanh.f32 %v829_v44 }
  0x32   : > { %1214 = vmatpush3.bf16.msra.mxu0 %v760_v20  ;;  %1215 = vmatprep.mubr.msk.bf16.mxu0 %vm1314_vm0, %v1313_v11  ;;  %1281 = vtanh.f32 %v832_v45 }
  0x33   : > { %1283 = vtanh.f32 %v833_v46 }
  0x34   : > { %1285 = vtanh.f32 %v834_v51 }
  0x35   : > { %1287 = vtanh.f32 %v835_v52 }
  0x39   : > { %v1270_v53 = vpop.eup %1269 }
  0x3a   : > { %v1272_v54 = vpop.eup %1271 }
  0x3b   : > { %v1274_v55 = vpop.eup %1273  ;;  %v846_v56 = vpack.c.bf16 %v1272_v54, %v1270_v53 }
  0x3c   : > { %v1276_v57 = vpop.eup %1275 }
  0x3d   : > { %v1278_v58 = vpop.eup %1277  ;;  %1216 = vmatmul.mubr.msk.bf16.vlgmr.msra.gmra.mxu0 %vm754_vm3, %v846_v56  ;;  %v848_v59 = vpack.c.bf16 %v1276_v57, %v1274_v55 }
  0x3e   : > { %v1280_v60 = vpop.eup %1279  ;;  %1219 = vmatprep.mubr.msk.bf16.mxu0 %vm1314_vm0, %v1313_v11 }
  0x3f   : > { %v1282_v61 = vpop.eup %1281  ;;  %1224 = vmatmul.mubr.msk.bf16.vlgmr.msra.gmra.mxu1 %vm754_vm3, %v848_v59  ;;  %v847_v63 = vpack.c.bf16 %v1280_v60, %v1278_v58 }
  0x40   : > { %v1284_v62 = vpop.eup %1283  ;;  %1227 = vmatprep.mubr.msk.bf16.mxu1 %vm1314_vm0, %v1313_v11 }
  0x41   : > { %v849_v0 = vpack.c.bf16 %v1284_v62, %v1282_v61  ;;  %v1286_v1 = vpop.eup %1285 }
  0x42   : > { %v1288_v2 = vpop.eup %1287 }
  0x43   : > { %v850_v3 = vpack.c.bf16 %v1288_v2, %v1286_v1 }
  0x45   : > { %1220 = vmatmul.mubr.msk.bf16.gmra.mxu0 %vm754_vm3, %v847_v63 }
  0x47   : > { %1228 = vmatmul.mubr.msk.bf16.gmra.mxu1 %vm754_vm3, %v849_v0 }
  0x48   : > { %1231 = vmatprep.mubr.msk.bf16.mxu1 %vm1314_vm0, %v1313_v11 }
  0x4f   : > { %1232 = vmatmul.mubr.msk.bf16.gmra.mxu1 %vm754_vm3, %v850_v3 }
  0xe9   : > { %v682_v5 = vpop.f32.mrf.mxu0 }
  0xea   : > { %v683_v6 = vadd.f32 %v1159_v4, %v682_v5 }
  0xeb   : > { %v746_v7 = vpop.f32.mrf.mxu1  ;;  %v1197_v8 = vpop.f32.mrf.mxu0 }
  0xec   : > { %v688_v10 = vmax.f32 %v683_v6, 0.0  ;;  %v747_v26 = vadd.f32 %v1163_v22, %v746_v7 }
  0xed   : > { %v1205_v12 = vpop.f32.mrf.mxu1  ;;  %v685_v13 = vpop.f32.mrf.mxu0 }
  0xee   : > { %v987_v14 = vmul.f32 %v1173_v9, %v688_v10 }
  0xef   : > { %v749_v11 = vpop.f32.mrf.mxu1  ;;  %v1198_v15 = vpop.f32.mrf.mxu0 }
  0xf0   : > { %v988_v16 = vsel %vm644_vm2, %v987_v14, 0.0 }
  0xf1   : > { %v1206_v17 = vpop.f32.mrf.mxu1  ;;  %v1517_v18 = vpop.f32.mrf.mxu0  ;;  %989 = vadd.xlane.f32.xlu0 %v988_v16 }
  0xf2   : > { %v802_v16 = vadd.f32 %v1517_v18, %v747_v26 }
  0xf3   : > { %v1211_v19 = vpop.f32.mrf.mxu0 }
  0xf5   : > { %v799_v20 = vpop.f32.mrf.mxu0 }
  0xf7   : > { %v1212_v21 = vpop.f32.mrf.mxu0 }
  0xf8   : > { %v803_v21 = vmax.f32 %v802_v16, 0.0 }
  0xfd   : > { %v900_v23 = vpop.f32.mrf.mxu0 }
  0xfe   : > { %v939_v29 = vadd.f32 %v900_v23, %v747_v26  ;;  %v1174_v23 = vld [vmem:[%s1565_s10] ss:$0 sm:$0xff] }
  0xff   : > { %v916_v24 = vpop.f32.mrf.mxu1  ;;  %v1217_v25 = vpop.f32.mrf.mxu0 }
 0x100   : > { %v949_v36 = vmax.f32 %v939_v29, 0.0  ;;  %v943_v40 = vadd.f32 %v916_v24, %v747_v26 }
 0x101   : > { %v1225_v27 = vpop.f32.mrf.mxu1  ;;  %v903_v28 = vpop.f32.mrf.mxu0 }
 0x102   : > { %v940_v30 = vadd.f32 %v903_v28, %v747_v26  ;;  %v959_v45 = vsel %vm644_vm2, %v949_v36, 0.0  ;;  %v953_v52 = vmax.f32 %v943_v40, 0.0  ;;  %v992_v28 = vstv %s991_s25 }
 0x103   : > { %v919_v31 = vpop.f32.mrf.mxu1  ;;  %v1218_v32 = vpop.f32.mrf.mxu0 }
 0x104   : > { %v950_v33 = vmax.f32 %v940_v30, 0.0  ;;  %v944_v46 = vadd.f32 %v919_v31, %v747_v26  ;;  %v966_v62 = vsel %vm644_vm2, %v953_v52, 0.0 }
 0x105   : > { %v1226_v34 = vpop.f32.mrf.mxu1  ;;  %v908_v35 = vpop.f32.mrf.mxu0 }
 0x106   : > { %v941_v37 = vadd.f32 %v908_v35, %v747_v26  ;;  %v960_v41 = vsel %vm644_vm2, %v950_v33, 0.0  ;;  %v954_v57 = vmax.f32 %v944_v46, 0.0 }
 0x107   : > { %v924_v38 = vpop.f32.mrf.mxu1  ;;  %v1221_v39 = vpop.f32.mrf.mxu0  ;;  %v961_v49 = vadd.f32 %v960_v41, %v959_v45 }
 0x108   : > { %v951_v42 = vmax.f32 %v941_v37, 0.0  ;;  %v945_v53 = vadd.f32 %v924_v38, %v747_v26  ;;  %v968_v3 = vsel %vm644_vm2, %v954_v57, 0.0 }
 0x109   : > { %v1229_v43 = vpop.f32.mrf.mxu1  ;;  %v911_v44 = vpop.f32.mrf.mxu0 }
 0x10a   : > { %v962_v47 = vsel %vm644_vm2, %v951_v42, 0.0  ;;  %v942_v48 = vadd.f32 %v911_v44, %v747_v26  ;;  %v955_v63 = vmax.f32 %v945_v53, 0.0 }
 0x10b   : > { %v927_v50 = vpop.f32.mrf.mxu1  ;;  %v1222_v51 = vpop.f32.mrf.mxu0  ;;  %v963_v55 = vadd.f32 %v962_v47, %v961_v49 }
 0x10c   : > { %v952_v54 = vmax.f32 %v942_v48, 0.0  ;;  %v946_v59 = vadd.f32 %v927_v50, %v747_v26  ;;  %v970_v7 = vsel %vm644_vm2, %v955_v63, 0.0 }
 0x10d   : > { %v1230_v56 = vpop.f32.mrf.mxu1 }
 0x10e   : > { %v964_v58 = vsel %vm644_vm2, %v952_v54, 0.0  ;;  %v956_v4 = vmax.f32 %v946_v59, 0.0 }
 0x10f   : > { %v965_v60 = vadd.f32 %v964_v58, %v963_v55  ;;  %v932_v61 = vpop.f32.mrf.mxu1 }
 0x110   : > { %v947_v0 = vadd.f32 %v932_v61, %v747_v26  ;;  %v972_v13 = vsel %vm644_vm2, %v956_v4, 0.0 }
 0x111   : > { %v967_v1 = vadd.f32 %v966_v62, %v965_v60  ;;  %v1233_v2 = vpop.f32.mrf.mxu1 }
 0x112   : > { %v957_v8 = vmax.f32 %v947_v0, 0.0 }
 0x113   : > { %v969_v5 = vadd.f32 %v968_v3, %v967_v1  ;;  %v935_v6 = vpop.f32.mrf.mxu1 }
 0x114   : > { %v948_v9 = vadd.f32 %v935_v6, %v747_v26  ;;  %v974_v15 = vsel %vm644_vm2, %v957_v8, 0.0 }
 0x115   : > { %v971_v10 = vadd.f32 %v970_v7, %v969_v5  ;;  %v1234_v12 = vpop.f32.mrf.mxu1 }
 0x116   : > { %v958_v14 = vmax.f32 %v948_v9, 0.0 }
 0x117   : > { %v973_v11 = vadd.f32 %v972_v13, %v971_v10 }
 0x118   : > { %v976_v19 = vsel %vm644_vm2, %v958_v14, 0.0 }
 0x119   : > { %v975_v17 = vadd.f32 %v974_v15, %v973_v11 }
 0x11b   : > { %v977_v20 = vadd.f32 %v976_v19, %v975_v17 }
 0x11d   : > { %v978_v22 = vmul.f32 0.1, %v977_v20 }
 0x11f   : > { %v994_v24 = vsub.f32 %v803_v21, %v978_v22 }
 0x121   : > { %v1001_v25 = vmul.f32 %v1174_v23, %v994_v24 }
 0x123   : > { %v1002_v27 = vsel %vm644_vm2, %v1001_v25, 0.0 }
 0x124   : > { %1003 = vadd.xlane.f32.xlu0 %v1002_v27 }
 0x17a   : > { %v990_v18 = vpop.xlane.xlu0 %989 }
 0x17b   : > { %v993_v26 = vadd.f32 %v992_v28, %v990_v18 }
 0x17d   : > { %1008 = vst.msk [vmem:[%s616_s26] sm:$0xff] %vm1006_vm4, %v993_v26 }
 0x1ad   : > { %v1004_v29 = vpop.xlane.xlu0 %1003 }
 0x1ae   : > { %v1005_v30 = vadd.f32 %v1004_v29, %v993_v26 }
 0x1b0   : > { %1007 = vst.msk [vmem:[%s612_s19] sm:$0xff] %vm1006_vm4, %v1005_v30 }
 0x1b1 PF: > { %p23_p9 = scmp.ge.s32.totalorder %s1410_s18, 4   ;;  %s1570_s15 = smov %s1307_s16 }
 0x1b2   : > { %s1571_s16 = smov %s1419_s21  ;;  %s1572_s17 = smov %s1410_s18 }
 0x1b3   :  { %25 = sbr.rel (!%p23_p9) target bundleno = 4 (0x4), region = 169 }

</bundles_post_ra>
